<compile_context>
chip_gen: v7x
topology: tpu7x:2x2x1
jax: 0.10.0
libtpu: 0.0.40
codegen_flags: <defaults>
</compile_context>

<pallas_src>
import functools
import math

import jax
import jax.numpy as jnp
from jax import lax
from jax.experimental import pallas as pl
from jax.experimental.pallas import tpu as pltpu


# ----------------------------------------------------------------------------
# Hardware-aware defaults
# ----------------------------------------------------------------------------
def _tpu_vmem_capacity_bytes():
    try:
        return int(pltpu.get_tpu_info().vmem_capacity_bytes)
    except Exception:
        return 64 * 1024 * 1024  # conservative (v7x-sized) fallback


def _default_max_batch_tile():
    # ~15 MiB/tile at 4096 rows; 128 MiB parts (v5e/v6e) can take 8192 rows.
    return 8192 if _tpu_vmem_capacity_bytes() >= 96 * 1024 * 1024 else 4096


def _pick_tiling(n, max_batch_tile):
    """Choose (splits, num_k, bn, n_pad) with splits*num_k*bn == n_pad >= n.

    Prefer a 2-way 'parallel' split of the batch (keeps both v7x TensorCores
    busy; a harmless extra outer iteration on single-core v5e/v6e).  bn is
    always a multiple of 8 (sublane rule); padding is masked in the kernel.
    """
    for splits in (2, 1):
        if splits > 1 and n < 16:
            continue  # too small to split into 8-row-aligned tiles
        per = -(-n // splits)                       # ceil
        num_k = max(1, -(-per // max_batch_tile))   # tiles per core split
        bn = -(-per // num_k)
        bn = ((bn + 7) // 8) * 8                    # sublane multiple
        n_pad = splits * num_k * bn
        if n_pad >= n:
            return splits, num_k, bn, n_pad
    return 1, 1, n, n


# ----------------------------------------------------------------------------
# Fused Pallas kernel: RFF projection + cos + raw Gram / column-sum partials
# ----------------------------------------------------------------------------
def _fused_rff_gram_kernel(x_ref, w_ref, b_ref, ones_ref, s_ref, m_ref,
                           *, bn, num_k, n_valid, need_mask):
    """Per (core_split c, batch tile k):
         phi  = cos([z|s] @ W_blockdiag + b_cat)      (un-scaled; scale in tail)
         S_c += phi^T phi                             (bf16 MXU, f32 accumulate)
         m_c += ones(8,bn) @ phi                      (column sums on the MXU)
       S_c / m_c live in the resident output blocks across the k ('arbitrary')
       axis; centering/scaling/b12/b21 happen in the plain-JAX tail.
    """
    k = pl.program_id(1)

    @pl.when(k == 0)
    def _init():
        s_ref[...] = jnp.zeros_like(s_ref)
        m_ref[...] = jnp.zeros_like(m_ref)

    # f32 projection (small: K = d_z + d_s). The MXU extended slot has slack
    # under the VALU-bound cos, so the default f32 multi-pass emulation is
    # hidden. TODO(synk): pin matmul precision / bf16 projection once the
    # cos-argument accuracy budget is validated for production shapes.
    proj = jnp.dot(x_ref[...], w_ref[...], preferred_element_type=jnp.float32)
    phi = jnp.cos(proj + b_ref[...])                       # (bn, D_tot), f32

    if need_mask:
        # Zero padded batch rows (cos(0 + b) != 0, so padding x is not enough).
        row0 = (pl.program_id(0) * num_k + k) * bn
        rows = row0 + lax.broadcasted_iota(jnp.int32, (bn, 1), 0)
        phi = jnp.where(rows < n_valid, phi, 0.0)

    # bf16 operands, f32 accumulation: single-pass MXU rate for the dominant
    # 256-wide Gram instead of the f32 multi-pass emulation.
    phi_b = phi.astype(jnp.bfloat16)

    s_ref[...] += lax.dot_general(phi_b, phi_b, (((0,), (0,)), ((), ())),
                                  preferred_element_type=jnp.float32)
    # Column sums as a tiny MXU matmul (all 8 result rows identical; the tail
    # reads row 0).  Rides the otherwise-idle extended slot; no XLU reduce,
    # no iota/where in the steady-state loop.
    m_ref[...] += jnp.dot(ones_ref[...], phi_b,
                          preferred_element_type=jnp.float32)


def _rff_gram_partials(z, s, w_cat, b_cat, *, max_batch_tile=None):
    """Per-core-split raw partials:
         S_part: (splits, D_tot, D_tot)  = sum over the split's rows of phi^T phi
         M_part: (splits, 8, D_tot)      = column sums of phi (row 0; rows equal)
       phi = cos([z|s] @ W_blockdiag + b_cat) — un-scaled, un-centered.
    """
    f32 = jnp.float32
    n, d_z = z.shape
    n_s, d_s = s.shape
    assert n == n_s, "z and s must share the batch dimension"
    d_cat, D_tot = w_cat.shape
    assert d_cat == d_z + d_s

    if max_batch_tile is None:
        max_batch_tile = _default_max_batch_tile()
    splits, num_k, bn, n_pad = _pick_tiling(n, max_batch_tile)
    need_mask = n_pad != n

    # Single block-diagonal projection keeps the MXU 256-wide on v6e/v7x.
    # TODO(synk): on v5e (128-wide MXU) split into two 128-wide projections and
    # a 3-block Gram; also accept a caller-preconcatenated [z|s] for very large
    # n to avoid this extra O(n*d_cat) HBM round-trip.
    x_cat = jnp.concatenate([z.astype(f32), s.astype(f32)], axis=1)
    if need_mask:
        x_cat = jnp.pad(x_cat, ((0, n_pad - n), (0, 0)))

    ones = jnp.ones((8, bn), jnp.bfloat16)

    kern = functools.partial(_fused_rff_gram_kernel, bn=bn, num_k=num_k,
                             n_valid=n, need_mask=need_mask)

    flops = (2 * n_pad * d_cat * D_tot        # RFF projection (f32)
             + 2 * n_pad * D_tot * D_tot      # bf16 Gram accumulation
             + 2 * n_pad * 8 * D_tot)         # ones-matmul column sums
    bytes_accessed = (4 * (n_pad * d_cat + d_cat * D_tot + D_tot)
                      + 2 * 8 * bn
                      + 4 * splits * (D_tot * D_tot + 8 * D_tot))
    cost = pl.CostEstimate(flops=flops, transcendentals=n_pad * D_tot,
                           bytes_accessed=bytes_accessed)

    vmem_cap = _tpu_vmem_capacity_bytes()
    vmem_limit = (96 * 1024 * 1024 if vmem_cap >= 96 * 1024 * 1024
                  else 48 * 1024 * 1024)

    return pl.pallas_call(
        kern,
        out_shape=(jax.ShapeDtypeStruct((splits, D_tot, D_tot), f32),
                   jax.ShapeDtypeStruct((splits, 8, D_tot), f32)),
        grid=(splits, num_k),
        in_specs=[pl.BlockSpec((bn, d_cat), lambda c, k: (c * num_k + k, 0)),
                  pl.BlockSpec((d_cat, D_tot), lambda c, k: (0, 0)),
                  pl.BlockSpec((1, D_tot), lambda c, k: (0, 0)),
                  pl.BlockSpec((8, bn), lambda c, k: (0, 0))],
        out_specs=(pl.BlockSpec((None, D_tot, D_tot), lambda c, k: (c, 0, 0)),
                   pl.BlockSpec((None, 8, D_tot), lambda c, k: (c, 0, 0))),
        compiler_params=pltpu.CompilerParams(
            dimension_semantics=("parallel", "arbitrary"),
            vmem_limit_bytes=vmem_limit),
        cost_estimate=cost,
    )(x_cat, w_cat, b_cat, ones)


# ----------------------------------------------------------------------------
# Parameter prep (built once, not per loss call)
# ----------------------------------------------------------------------------
def prepare_rff_params(params):
    f32 = jnp.float32
    w_z = jnp.asarray(params["w_z"], f32)
    w_s = jnp.asarray(params["w_s"], f32)
    d_z, Dz = w_z.shape
    d_s, Ds = w_s.shape
    b_z = jnp.reshape(jnp.asarray(params["b_z"], f32), (1, Dz))
    b_s = jnp.reshape(jnp.asarray(params["b_s"], f32), (1, Ds))
    # Block-diagonal projection: one (n, d_z+d_s) @ (d_z+d_s, Dz+Ds) MXU pass
    # computes both RFF feature maps on the full 256-wide MXU (v6e/v7x).
    w_cat = jnp.zeros((d_z + d_s, Dz + Ds), f32)
    w_cat = w_cat.at[:d_z, :Dz].set(w_z)
    w_cat = w_cat.at[d_z:, Dz:].set(w_s)
    b_cat = jnp.concatenate([b_z, b_s], axis=1)
    return {"w_cat": w_cat, "b_cat": b_cat,
            "d_z": d_z, "d_s": d_s, "Dz": Dz, "Ds": Ds}


# ----------------------------------------------------------------------------
# JAX tail: scale, center, b12/b21 (all O(D^2), done once)
# ----------------------------------------------------------------------------
def fused_rff_gram(z, s, prepared, *, max_batch_tile=None):
    """Returns (G, b12, b21) with
         G   = [phi_z_c | phi_s_c]^T [phi_z_c | phi_s_c]   (centered, un-ridged)
         b12 = (phi_z_c^T phi_s_c)(phi_z_c^T phi_s_c)^T / n
         b21 = (phi_s_c^T phi_z_c)(phi_s_c^T phi_z_c)^T / n
    """
    n = z.shape[0]
    Dz, Ds = prepared["Dz"], prepared["Ds"]
    S_part, M_part = _rff_gram_partials(z, s, prepared["w_cat"],
                                        prepared["b_cat"],
                                        max_batch_tile=max_batch_tile)
    S = jnp.sum(S_part, axis=0)                 # raw (un-scaled) cos Gram
    m = jnp.sum(M_part[:, 0, :], axis=0)        # raw column sums

    # Hoisted RFF scale (sqrt(2/D) per feature map) — columnwise scaling
    # commutes with the Gram, so it is applied once here instead of per tile.
    scale = jnp.concatenate(
        [jnp.full((Dz,), math.sqrt(2.0 / Dz), S.dtype),
         jnp.full((Ds,), math.sqrt(2.0 / Ds), S.dtype)])
    G = S * (scale[:, None] * scale[None, :])
    ms = m * scale
    G = G - jnp.outer(ms, ms) * (1.0 / n)       # mean-centering: S - (1/n) m m^T

    czs = G[:Dz, Dz:] * (1.0 / math.sqrt(n))    # pre-scale by 1/sqrt(n)
    b12 = czs @ czs.T
    b21 = czs.T @ czs
    return G, b12, b21


def _max_generalized_eig(a, b):
    # torch: max(real(eigvals(inv(a) @ b))).  a is SPD (ridged Gram), b is
    # symmetric PSD, so those eigenvalues are real and equal those of the
    # symmetric matrix L^{-1} b L^{-T} with a = L L^T.
    # TODO(synk): general non-symmetric eigvals / matrix inverse has no
    # Pallas/TPU equivalent; this Cholesky-whitened symmetric path is the
    # mathematically equivalent TPU-safe formulation.
    L = jnp.linalg.cholesky(a)
    lb = jax.scipy.linalg.solve_triangular(L, b, lower=True)        # L^{-1} b
    mm = jax.scipy.linalg.solve_triangular(L, lb.T, lower=True).T   # L^{-1} b L^{-T}
    mm = 0.5 * (mm + mm.T)
    return jnp.max(jnp.linalg.eigvalsh(mm))


def np_sym_hyb_adversary_loss(z, s, prepared, *, gamma, norm_s,
                              max_batch_tile=None):
    n = z.shape[0]
    Dz, Ds = prepared["Dz"], prepared["Ds"]

    G, b12, b21 = fused_rff_gram(z, s, prepared, max_batch_tile=max_batch_tile)
    gz = G[:Dz, :Dz]            # phi_z_c^T phi_z_c  (un-ridged)
    gs = G[Dz:, Dz:]            # phi_s_c^T phi_s_c

    ridge = gamma * n
    a12 = gz + ridge * jnp.eye(Dz, dtype=G.dtype)
    a21 = gs + ridge * jnp.eye(Ds, dtype=G.dtype)

    eigs_12 = _max_generalized_eig(a12, b12)
    eigs_21 = _max_generalized_eig(a21, b21)

    # torch.linalg.norm(phi_z^T phi_z, 2) == largest |eigenvalue| (symmetric PSD)
    norm_z = jnp.max(jnp.abs(jnp.linalg.eigvalsh(0.5 * (gz + gz.T)))) / n

    return jnp.minimum(-eigs_12 / norm_s, -eigs_21 / norm_z)


# ----------------------------------------------------------------------------
# Pure-JAX reference of the kernel outputs (numerical self-check)
# ----------------------------------------------------------------------------
def _reference_grams(z, s, params):
    def rff_center(x, w, b):
        D = w.shape[1]
        phi = math.sqrt(2.0 / D) * jnp.cos(x @ w + jnp.reshape(b, (1, D)))
        return phi - jnp.mean(phi, axis=0, keepdims=True)

    n = z.shape[0]
    pz = rff_center(z, params["w_z"], params["b_z"])
    ps = rff_center(s, params["w_s"], params["b_s"])
    phi = jnp.concatenate([pz, ps], axis=1)
    G = phi.T @ phi
    czs = pz.T @ ps
    return G, (czs @ czs.T) / n, (czs.T @ czs) / n


def _check_case(key, params, prepared, n, max_bt, tag):
    kz, ks = jax.random.split(key)
    z = jax.random.normal(kz, (n, params["w_z"].shape[0]), jnp.float32)
    s = jax.random.normal(ks, (n, params["w_s"].shape[0]), jnp.float32)
    got = fused_rff_gram(z, s, prepared, max_batch_tile=max_bt)
    ref = _reference_grams(z, s, params)
    for name, g, r in zip(("G", "b12", "b21"), got, ref):
        err = float(jnp.max(jnp.abs(g - r)))
        tol = 3e-3 + 1e-2 * float(jnp.max(jnp.abs(r)))  # bf16-Gram budget
        if err > tol:
            raise AssertionError(f"[{tag}] {name}: mismatch {err} > {tol}")


# ----------------------------------------------------------------------------
if __name__ == "__main__":
    key = jax.random.PRNGKey(0)
    d_z, d_s = 32, 8                  # z-features, s-features
    rff_dim_z, rff_dim_s = 128, 128   # RFF feature dims (lane-aligned)

    kparams, kdata = jax.random.split(key)
    kwz, kws, kbz, kbs = jax.random.split(kparams, 4)
    params = {
        "w_z": jax.random.normal(kwz, (d_z, rff_dim_z), jnp.float32),
        "b_z": jax.random.uniform(kbz, (1, rff_dim_z), jnp.float32,
                                  0.0, 2.0 * math.pi),
        "w_s": jax.random.normal(kws, (d_s, rff_dim_s), jnp.float32),
        "b_s": jax.random.uniform(kbs, (1, rff_dim_s), jnp.float32,
                                  0.0, 2.0 * math.pi),
    }
    prepared = prepare_rff_params(params)   # constant param tensors built once

    # Self-checks: aligned single tile, ragged (pad+mask), 2-way core split
    # with multiple batch tiles, and ragged + split + multi-tile.
    cases = [(8, None, "n=8 single-tile"),
             (12, None, "n=12 ragged/masked"),
             (32, 8, "n=32 split+multi-tile"),
             (20, 8, "n=20 ragged+split")]
    case_keys = jax.random.split(kdata, len(cases) + 1)
    for (n_case, mbt, tag), kc in zip(cases, case_keys[:-1]):
        _check_case(kc, params, prepared, n_case, mbt, tag)

    kz, ks = jax.random.split(case_keys[-1])
    z = jax.random.normal(kz, (8, d_z), jnp.float32)
    s = jax.random.normal(ks, (8, d_s), jnp.float32)
    loss = np_sym_hyb_adversary_loss(z, s, prepared, gamma=0.01, norm_s=1.0)
    jax.block_until_ready(loss)
    print("KERNEL_OK")
</pallas_src>

<mosaic_0001>
module attributes {stable_mosaic.version = 11 : i64} {
  func.func @_fused_rff_gram_kernel(%arg0: i32, %arg1: i32, %arg2: memref<8x40xf32, #tpu.memory_space<vmem>>, %arg3: memref<40x256xf32, #tpu.memory_space<vmem>>, %arg4: memref<1x256xf32, #tpu.memory_space<vmem>>, %arg5: memref<8x8xbf16, #tpu.memory_space<vmem>>, %arg6: memref<1x256x256xf32, #tpu.memory_space<vmem>>, %arg7: memref<1x8x256xf32, #tpu.memory_space<vmem>>) attributes {dimension_semantics = [#tpu.dimension_semantics<parallel>, #tpu.dimension_semantics<arbitrary>], iteration_bounds = array<i64: 1, 1>, scalar_prefetch = 0 : i64, scratch_operands = 0 : i64, tpu.core_type = #tpu.core_type<tc>, window_params = [{transform_indices = @transform_0, window_bounds = array<i64: 8, 40>}, {pipeline_mode = #tpu.pipeline_mode<synchronous>, transform_indices = @transform_1, window_bounds = array<i64: 40, 256>}, {pipeline_mode = #tpu.pipeline_mode<synchronous>, transform_indices = @transform_2, window_bounds = array<i64: 1, 256>}, {pipeline_mode = #tpu.pipeline_mode<synchronous>, transform_indices = @transform_3, window_bounds = array<i64: 8, 8>}, {transform_indices = @transform_4, window_bounds = array<i64: 1, 256, 256>}, {transform_indices = @transform_5, window_bounds = array<i64: 1, 8, 256>}]} {
    %c0_i32 = arith.constant 0 : i32
    %0 = arith.cmpi eq, %arg1, %c0_i32 : i32
    %1 = arith.extui %0 : i1 to i32
    %c0_i32_0 = arith.constant 0 : i32
    %2 = arith.cmpi ne, %1, %c0_i32_0 : i32
    scf.if %2 {
      %cst_22 = arith.constant 0.000000e+00 : f32
      %26 = vector.broadcast %cst_22 : f32 to vector<256x256xf32>
      %c0_23 = arith.constant 0 : index
      %c0_24 = arith.constant 0 : index
      %c0_25 = arith.constant 0 : index
      %27 = vector.load %arg6[%c0_23, %c0_24, %c0_25] : memref<1x256x256xf32, #tpu.memory_space<vmem>>, vector<1x256x256xf32>
      %28 = vector.shape_cast %27 : vector<1x256x256xf32> to vector<256x256xf32>
      %29 = vector.shape_cast %26 : vector<256x256xf32> to vector<1x256x256xf32>
      tpu.vector_store %arg6[%c0_23, %c0_24, %c0_25], %29 {strides = array<i32>} : memref<1x256x256xf32, #tpu.memory_space<vmem>>, vector<1x256x256xf32>,
      %cst_26 = arith.constant 0.000000e+00 : f32
      %30 = vector.broadcast %cst_26 : f32 to vector<8x256xf32>
      %c0_27 = arith.constant 0 : index
      %c0_28 = arith.constant 0 : index
      %c0_29 = arith.constant 0 : index
      %31 = vector.load %arg7[%c0_27, %c0_28, %c0_29] : memref<1x8x256xf32, #tpu.memory_space<vmem>>, vector<1x8x256xf32>
      %32 = vector.shape_cast %31 : vector<1x8x256xf32> to vector<8x256xf32>
      %33 = vector.shape_cast %30 : vector<8x256xf32> to vector<1x8x256xf32>
      tpu.vector_store %arg7[%c0_27, %c0_28, %c0_29], %33 {strides = array<i32>} : memref<1x8x256xf32, #tpu.memory_space<vmem>>, vector<1x8x256xf32>,
    } else {
    }
    %c0 = arith.constant 0 : index
    %c0_1 = arith.constant 0 : index
    %3 = vector.load %arg2[%c0, %c0_1] : memref<8x40xf32, #tpu.memory_space<vmem>>, vector<8x40xf32>
    %c0_2 = arith.constant 0 : index
    %c0_3 = arith.constant 0 : index
    %4 = vector.load %arg3[%c0_2, %c0_3] : memref<40x256xf32, #tpu.memory_space<vmem>>, vector<40x256xf32>
    %cst = arith.constant dense<0.000000e+00> : vector<8x256xf32>
    %5 = tpu.matmul %3, %4, %cst {dimension_numbers = #tpu.dot_dimension_numbers<[1], [0], [0], [1], [0, 0, 1, 1], [], []>} : vector<8x40xf32>, vector<40x256xf32>, vector<8x256xf32> -> vector<8x256xf32>
    %c0_4 = arith.constant 0 : index
    %c0_5 = arith.constant 0 : index
    %6 = vector.load %arg4[%c0_4, %c0_5] : memref<1x256xf32, #tpu.memory_space<vmem>>, vector<1x256xf32>
    %7 = vector.broadcast %6 : vector<1x256xf32> to vector<8x256xf32>
    %8 = arith.addf %5, %7 : vector<8x256xf32>
    %9 = math.cos %8 : vector<8x256xf32>
    %10 = arith.truncf %9 : vector<8x256xf32> to vector<8x256xbf16>
    %c0_6 = arith.constant 0 : index
    %c0_7 = arith.constant 0 : index
    %c0_8 = arith.constant 0 : index
    %11 = vector.load %arg6[%c0_6, %c0_7, %c0_8] : memref<1x256x256xf32, #tpu.memory_space<vmem>>, vector<1x256x256xf32>
    %12 = vector.shape_cast %11 : vector<1x256x256xf32> to vector<256x256xf32>
    %cst_9 = arith.constant dense<0.000000e+00> : vector<256x256xf32>
    %13 = tpu.matmul %10, %10, %cst_9 {dimension_numbers = #tpu.dot_dimension_numbers<[0], [0], [1], [1], [0, 1, 1, 1], [], []>} : vector<8x256xbf16>, vector<8x256xbf16>, vector<256x256xf32> -> vector<256x256xf32>
    %14 = arith.addf %12, %13 : vector<256x256xf32>
    %c0_10 = arith.constant 0 : index
    %c0_11 = arith.constant 0 : index
    %c0_12 = arith.constant 0 : index
    %15 = vector.load %arg6[%c0_10, %c0_11, %c0_12] : memref<1x256x256xf32, #tpu.memory_space<vmem>>, vector<1x256x256xf32>
    %16 = vector.shape_cast %15 : vector<1x256x256xf32> to vector<256x256xf32>
    %17 = vector.shape_cast %14 : vector<256x256xf32> to vector<1x256x256xf32>
    tpu.vector_store %arg6[%c0_10, %c0_11, %c0_12], %17 {strides = array<i32>} : memref<1x256x256xf32, #tpu.memory_space<vmem>>, vector<1x256x256xf32>,
    %c0_13 = arith.constant 0 : index
    %c0_14 = arith.constant 0 : index
    %c0_15 = arith.constant 0 : index
    %18 = vector.load %arg7[%c0_13, %c0_14, %c0_15] : memref<1x8x256xf32, #tpu.memory_space<vmem>>, vector<1x8x256xf32>
    %19 = vector.shape_cast %18 : vector<1x8x256xf32> to vector<8x256xf32>
    %c0_16 = arith.constant 0 : index
    %c0_17 = arith.constant 0 : index
    %20 = vector.load %arg5[%c0_16, %c0_17] : memref<8x8xbf16, #tpu.memory_space<vmem>>, vector<8x8xbf16>
    %cst_18 = arith.constant dense<0.000000e+00> : vector<8x256xf32>
    %21 = tpu.matmul %20, %10, %cst_18 {dimension_numbers = #tpu.dot_dimension_numbers<[1], [0], [0], [1], [0, 0, 1, 1], [], []>} : vector<8x8xbf16>, vector<8x256xbf16>, vector<8x256xf32> -> vector<8x256xf32>
    %22 = arith.addf %19, %21 : vector<8x256xf32>
    %c0_19 = arith.constant 0 : index
    %c0_20 = arith.constant 0 : index
    %c0_21 = arith.constant 0 : index
    %23 = vector.load %arg7[%c0_19, %c0_20, %c0_21] : memref<1x8x256xf32, #tpu.memory_space<vmem>>, vector<1x8x256xf32>
    %24 = vector.shape_cast %23 : vector<1x8x256xf32> to vector<8x256xf32>
    %25 = vector.shape_cast %22 : vector<8x256xf32> to vector<1x8x256xf32>
    tpu.vector_store %arg7[%c0_19, %c0_20, %c0_21], %25 {strides = array<i32>} : memref<1x8x256xf32, #tpu.memory_space<vmem>>, vector<1x8x256xf32>,
    return
  }
  func.func @transform_0(%arg0: i32, %arg1: i32) -> (i32, i32) {
    %c1_i32 = arith.constant 1 : i32
    %0 = arith.muli %arg0, %c1_i32 : i32
    %1 = arith.addi %0, %arg1 : i32
    %c0_i32 = arith.constant 0 : i32
    %c0_i32_0 = arith.constant 0 : i32
    return %1, %c0_i32 : i32, i32
  }
  func.func @transform_1(%arg0: i32, %arg1: i32) -> (i32, i32) {
    %c0_i32 = arith.constant 0 : i32
    %c0_i32_0 = arith.constant 0 : i32
    %c0_i32_1 = arith.constant 0 : i32
    return %c0_i32, %c0_i32_0 : i32, i32
  }
  func.func @transform_2(%arg0: i32, %arg1: i32) -> (i32, i32) {
    %c0_i32 = arith.constant 0 : i32
    %c0_i32_0 = arith.constant 0 : i32
    %c0_i32_1 = arith.constant 0 : i32
    return %c0_i32, %c0_i32_0 : i32, i32
  }
  func.func @transform_3(%arg0: i32, %arg1: i32) -> (i32, i32) {
    %c0_i32 = arith.constant 0 : i32
    %c0_i32_0 = arith.constant 0 : i32
    %c0_i32_1 = arith.constant 0 : i32
    return %c0_i32, %c0_i32_0 : i32, i32
  }
  func.func @transform_4(%arg0: i32, %arg1: i32) -> (i32, i32, i32) {
    %c0_i32 = arith.constant 0 : i32
    %c0_i32_0 = arith.constant 0 : i32
    %c0_i32_1 = arith.constant 0 : i32
    return %arg0, %c0_i32, %c0_i32_0 : i32, i32, i32
  }
  func.func @transform_5(%arg0: i32, %arg1: i32) -> (i32, i32, i32) {
    %c0_i32 = arith.constant 0 : i32
    %c0_i32_0 = arith.constant 0 : i32
    %c0_i32_1 = arith.constant 0 : i32
    return %arg0, %c0_i32, %c0_i32_0 : i32, i32, i32
  }
}

</mosaic_0001>

<bundles_post_ra>
// kernel: tpu_custom_call.1
= control target key start
LH: loop header
LB: loop body
LE: loop exit
PB: predicated region body
PF: predicated region fallthrough
CT: control target
= control target key end

     0   :  { %11 = vsyncpa [#allocation3], 0  ;;  %s1391_s0 = inlined_call_operand.hbm [shape: f32[8,40], index: 0, kind: input, shape index: {}]   ;;  %s1392_s1 = inlined_call_operand.hbm [shape: f32[40,256], index: 1, kind: input, shape index: {}]   ;;  %s1393_s2 = inlined_call_operand.vmem [shape: f32[1,256], index: 2, kind: input, shape index: {}]   ;;  %s1394_s3 = inlined_call_operand.vmem [shape: bf16[8,8], index: 3, kind: input, shape index: {}]   ;;  %s1395_s4 = inlined_call_operand.hbm [shape: f32[1,256,256], index: 4, kind: output, shape index: {0}]   ;;  %s1396_s5 = inlined_call_operand.hbm [shape: f32[1,8,256], index: 5, kind: output, shape index: {1}]  }
   0x1   :  { %12 = vsyncpa [#allocation6], 0 }
   0x2   :  { %13 = vsyncpa [#allocation4], 0 }
   0x3   :  { %14 = vsyncpa [#allocation9], 0  ;;  %s1148_s18 = smov [#allocation2]   ;;  %s1149_s20 = smov [#allocation5]  }
   0x4   :  { %s24_s19 = sshll.u32 %s1148_s18, 4  ;;  %s33_s21 = sshll.u32 %s1149_s20, 4  ;;  %s25_s19 = int_to_ptr.vmem [resolvable:$true] %s24_s19  ;;  %s1192_s21 = int_to_ptr.vmem [resolvable:$true] %s33_s21 }
   0x5   :  { %s1052_s24 = scalar_lea.hbm %s1391_s0, 128 }
   0x6   :  { %p1053_p0 = scmp.ne.s32.totalorder %s1391_s0, %s1052_s24  ;;  %p1056_p1 = scmp.lt.u32.totalorder %s1052_s24, %s1391_s0 }
   0x8   :  { %p1058_p2 = pnand %p1056_p1, %p1053_p0 }
   0xa   :  { %1061 = shalt.err (!%p1058_p2)
}
   0xb   :  { %s1062_s29 = scalar_lea.vmem %s25_s19, 128  ;;  %p1067_p4 = scmp.lt.s32.totalorder %s25_s19, %s25_s19 }
   0xc   :  { %p1063_p3 = scmp.ne.s32.totalorder %s25_s19, %s1062_s29  ;;  %p1068_p5 = scmp.lt.s32.totalorder %s1062_s29, %s1062_s29 }
   0xe   :  { %p1069_p6 = por %p1068_p5, %p1067_p4 }
  0x10   :  { %p1070_p7 = pnand %p1069_p6, %p1063_p3 }
  0x12   :  { %1073 = shalt.err (!%p1070_p7)
}
  0x13   :  { %27 = dma.hbm_to_vmem [thread:$0]  %s1391_s0, 128, %s25_s19, [#allocation3]  }
  0x14   :  { %s1074_s9 = scalar_lea.hbm %s1392_s1, 1280 }
  0x15   :  { %p1075_p8 = scmp.ne.s32.totalorder %s1392_s1, %s1074_s9  ;;  %p1078_p9 = scmp.lt.u32.totalorder %s1074_s9, %s1392_s1 }
  0x17   :  { %p1080_p10 = pnand %p1078_p9, %p1075_p8 }
  0x19   :  { %1083 = shalt.err (!%p1080_p10)
}
  0x1a   :  { %s1084_s14 = scalar_lea.vmem %s1192_s21, 1280  ;;  %p1089_p12 = scmp.lt.s32.totalorder %s1192_s21, %s1192_s21 }
  0x1b   :  { %p1085_p11 = scmp.ne.s32.totalorder %s1192_s21, %s1084_s14  ;;  %p1090_p13 = scmp.lt.s32.totalorder %s1084_s14, %s1084_s14 }
  0x1d   :  { %p1091_p0 = por %p1090_p13, %p1089_p12 }
  0x1f   :  { %p1092_p1 = pnand %p1091_p0, %p1085_p11 }
  0x21   :  { %1095 = shalt.err (!%p1092_p1)
}
  0x22   :  { %s1150_s0 = smov 256   ;;  %s1151_s15 = smov 16  }
  0x23   :  { %39 = dma.hbm_to_vmem [thread:$0]  %s1392_s1, 1280, %s1192_s21, [#allocation6], %s1150_s0, %s1150_s0, %s1151_s15  }
  0x24   :  { %1140 = dma.done.wait [#allocation3], 128  }
  0x25   :  { %1141 = vsyncadd [#allocation3], 4294967168 }
  0x26   :  { %1142 = dma.done.wait [#allocation6], 1280  }
  0x27   :  { %1143 = vsyncadd [#allocation6], 4294966016  ;;  %v1152_v0 = vmov 0.0   ;;  %v124_v1 = vld [vmem:[#allocation5 + $0x8] sm:$0xff]  ;;  %v126_v2 = vld [vmem:[#allocation5 + $0x18] sm:$0xff]  ;;  %vm145_vm0 = vcmask 326656   ;;  %v135_v16 = vlaneseq }
  0x28   :  { %213 = vmatprep.mubr.f32.mxu0 %v1152_v0  ;;  %v123_v3 = vld [vmem:[#allocation5] sm:$0xff]  ;;  %v1012_v4 = vpack.c.bf16 %v126_v2, %v124_v1  ;;  %v125_v5 = vld [vmem:[#allocation5 + $0x10] sm:$0xff]  ;;  %v128_v6 = vld [vmem:[#allocation5 + $0x28] sm:$0xff]  ;;  %v1153_v23 = vmov 0   ;;  %v1154_v51 = vmov 2102212464  }
  0x29   :  { %v130_v7 = vld [vmem:[#allocation5 + $0x38] sm:$0xff]  ;;  %v1014_v8 = vpack.c.bf16 %v125_v5, %v123_v3  ;;  %v127_v10 = vld [vmem:[#allocation5 + $0x20] sm:$0xff]  ;;  %v129_v11 = vld [vmem:[#allocation5 + $0x30] sm:$0xff]  ;;  %v136_v17 = vshrl.u32 %v135_v16, 7  ;;  %672 = vmatprep.mubr.bf16.mxu1 %v1153_v23  ;;  %v1155_v53 = vmov 920167782  }
  0x2a   :  { %v1016_v9 = vpack.c.bf16 %v130_v7, %v128_v6  ;;  %1013 = vmatprep.subr.bf16.mxu0 %v1012_v4  ;;  %v1018_v12 = vpack.c.bf16 %v129_v11, %v127_v10  ;;  %v132_v13 = vld [vmem:[#allocation5 + $0x48] sm:$0xff]  ;;  %v131_v14 = vld [vmem:[#allocation5 + $0x40] sm:$0xff]  ;;  %v122_v15 = vld [vmem:[#allocation2] sm:$0xff]  ;;  %v1156_v56 = vmov 683565275  }
  0x2b   :  { %1015 = vmatpush1.bf16.msra.mxu0 %v1014_v8  ;;  %v137_v18 = vsub.s32 0, %v136_v17  ;;  %v133_v19 = vld [vmem:[%s1393_s2] sm:$0x3]  ;;  %v141_v20 = vsub.s32 1, %v136_v17  ;;  %v1157_v59 = vmov 1326507024  }
  0x2c   :  { %1017 = vmatprep.subr.bf16.mxu0 %v1016_v9  ;;  %v1158_v61 = vmov 2475754826   ;;  %v1159_v63 = vmov 2131351028  }
  0x2d   :  { %v138_v21 = vrot.slane %v133_v19, %v137_v18  ;;  %v142_v22 = vrot.slane %v133_v19, %v141_v20 }
  0x2f   :  { %1019 = vmatpush1.bf16.msra.mxu0 %v1018_v12 }
  0x30   :  { %157 = vmatprep.subr.mxu0 %v132_v13 }
  0x33   :  { %158 = vmatpush1.msra.mxu0 %v131_v14 }
  0x34   :  { %984 = vmatmul.mubr.msk.f32.vlgmr.msra.gmra.mrb[0].mxu0 %vm145_vm0, %v122_v15 }
  0x35   :  { %612 = vmatprep.mubr.bf16.mxu0 %v1153_v23 }
 0x107   :  { %v215_v24 = vpop.f32.mrb[0].mxu0 }
 0x108   :  { %v1231_v25 = vadd.f32 %v215_v24, %v138_v21  ;;  %v217_v26 = vpop.f32.mrb[1].mxu0 }
 0x109   :  { %v1233_v27 = vadd.f32 %v217_v26, %v142_v22 }
 0x10a   :  { %v223_v28 = vand.u32 2139095040, %v1231_v25  ;;  %v220_v29 = vand.u32 2147483647, %v1231_v25 }
 0x10b   :  { %v323_v30 = vand.u32 2147483647, %v1233_v27  ;;  %v326_v31 = vand.u32 2139095040, %v1233_v27  ;;  %vm325_vm15 = vcmp.lt.s32.totalorder %v1233_v27, 0 }
 0x10c   :  { %v224_v32 = vshrl.u32 %v223_v28, 23  ;;  %v227_v34 = vand.u32 8388607, %v220_v29 }
 0x10d   :  { %v327_v33 = vshrl.u32 %v326_v31, 23  ;;  %v330_v36 = vand.u32 8388607, %v323_v30  ;;  %vm1302_vm0 = vcmp.le.f32.partialorder %v323_v30, 0.7853982 }
 0x10e   :  { %v985_v35 = vadd.s32 4294967169, %v224_v32  ;;  %v228_v40 = vor.u32 8388608, %v227_v34 }
 0x10f   :  { %v989_v37 = vadd.s32 4294967169, %v327_v33  ;;  %v331_v41 = vor.u32 8388608, %v330_v36 }
 0x110   :  { %v230_v38 = vadd.s32 1, %v985_v35  ;;  %v1245_v46 = vshll.u32 %v228_v40, 8 }
 0x111   :  { %v333_v39 = vadd.s32 1, %v989_v37  ;;  %v1250_v50 = vshll.u32 %v331_v41, 8 }
 0x112   :  { %vm231_vm1 = vcmp.gt.s32.totalorder %v230_v38, 0 }
 0x113   :  { %v232_v42 = vsel %vm231_vm1, %v230_v38, 0  ;;  %vm334_vm2 = vcmp.gt.s32.totalorder %v333_v39, 0  ;;  %vm222_vm1 = vcmp.lt.s32.totalorder %v1231_v25, 0 }
 0x114   :  { %v1243_v43 = vand.u32 31, %v232_v42  ;;  %v335_v44 = vsel %vm334_vm2, %v333_v39, 0  ;;  %v1247_v47 = vshrl.u32 %v232_v42, 5  ;;  %vm1314_vm2 = vcmp.le.f32.partialorder %v220_v29, 0.7853982 }
 0x115   :  { %v337_v45 = vand.u32 31, %v335_v44  ;;  %v336_v49 = vshrl.u32 %v335_v44, 5 }
 0x116   :  { %v235_v48 = vsub.s32 32, %v1243_v43  ;;  %v246_v52 = vshll.u32 %v1154_v51, %v1243_v43  ;;  %v249_v54 = vshll.u32 %v1155_v53, %v1243_v43  ;;  %vm255_vm4 = vcmp.lt.s32.totalorder %v1247_v47, 4 }
 0x117   :  { %v338_v55 = vsub.s32 32, %v337_v45  ;;  %v340_v57 = vshll.u32 %v1156_v56, %v337_v45  ;;  %v343_v62 = vshll.u32 %v1158_v61, %v337_v45  ;;  %v346_v0 = vshll.u32 %v1159_v63, %v337_v45 }
 0x118   :  { %v247_v58 = vshrl.u32 %v1155_v53, %v235_v48  ;;  %v250_v60 = vshrl.u32 %v1157_v59, %v235_v48  ;;  %v349_v4 = vshll.u32 %v1154_v51, %v337_v45  ;;  %v352_v7 = vshll.u32 %v1155_v53, %v337_v45 }
 0x119   :  { %v341_v1 = vshrl.u32 %v1158_v61, %v338_v55  ;;  %v344_v2 = vshrl.u32 %v1159_v63, %v338_v55  ;;  %v347_v3 = vshrl.u32 %v1154_v51, %v338_v55  ;;  %v339_v5 = vshrl.u32 %v1156_v56, %v338_v55 }
 0x11a   :  { %v350_v6 = vshrl.u32 %v1155_v53, %v338_v55  ;;  %v353_v8 = vshrl.u32 %v1157_v59, %v338_v55  ;;  %v248_v9 = vor.u32 %v247_v58, %v246_v52  ;;  %v251_v13 = vor.u32 %v250_v60, %v249_v54 }
 0x11b   :  { %v342_v10 = vor.u32 %v341_v1, %v340_v57  ;;  %v345_v11 = vor.u32 %v344_v2, %v343_v62  ;;  %v348_v12 = vor.u32 %v347_v3, %v346_v0  ;;  %vm355_vm3 = vcmp.lt.s32.totalorder %v336_v49, 1 }
 0x11c   :  { %v351_v14 = vor.u32 %v350_v6, %v349_v4  ;;  %v354_v15 = vor.u32 %v353_v8, %v352_v7  ;;  %vm357_vm5 = vcmp.lt.s32.totalorder %v336_v49, 3  ;;  %vm358_vm6 = vcmp.lt.s32.totalorder %v336_v49, 4 }
 0x11d   :  { %v359_v16 = vsel %vm355_vm3, %v339_v5, %v342_v10  ;;  %v360_v17 = vsel %vm358_vm6, %v348_v12, 2102212464  ;;  %v363_v18 = vsel %vm355_vm3, %v342_v10, %v345_v11  ;;  %v367_v20 = vsel %vm355_vm3, %v345_v11, %v348_v12 }
 0x11e   :  { %v364_v19 = vsel %vm358_vm6, %v351_v14, 920167782  ;;  %vm356_vm7 = vcmp.lt.s32.totalorder %v336_v49, 2  ;;  %v361_v21 = vsel %vm357_vm5, %v345_v11, %v360_v17  ;;  %v368_v24 = vsel %vm358_vm6, %v354_v15, 1326507024 }
 0x11f   :  { %v365_v22 = vsel %vm357_vm5, %v348_v12, %v364_v19  ;;  %v261_v26 = vsel %vm255_vm4, %v248_v9, 920167782  ;;  %v265_v28 = vsel %vm255_vm4, %v251_v13, 1326507024  ;;  %v369_v32 = vsel %vm357_vm5, %v351_v14, %v368_v24 }
 0x120   :  { %v366_v31 = vsel %vm356_vm7, %v363_v18, %v365_v22  ;;  %v362_v33 = vsel %vm356_vm7, %v359_v16, %v361_v21  ;;  %v370_v34 = vsel %vm356_vm7, %v367_v20, %v369_v32  ;;  %v237_v39 = vshll.u32 %v1156_v56, %v1243_v43 }
 0x121   :  { %v1260_v35 = vmul.u32.u64.low %v1250_v50, %v366_v31  ;;  %v1261_v36 = vmul.u32.u64.high %v1250_v50, %v366_v31, %v1260_v35  ;;  %v1264_v37 = vmul.u32.u64.low %v1250_v50, %v370_v34  ;;  %v1265_v38 = vmul.u32.u64.high %v1250_v50, %v370_v34, %v1264_v37 }
 0x122   :  { %v238_v40 = vshrl.u32 %v1158_v61, %v235_v48  ;;  %v240_v41 = vshll.u32 %v1158_v61, %v1243_v43  ;;  %v241_v42 = vshrl.u32 %v1159_v63, %v235_v48  ;;  %v243_v44 = vshll.u32 %v1159_v63, %v1243_v43 }
 0x123   :  { %v244_v45 = vshrl.u32 %v1154_v51, %v235_v48  ;;  %v378_v49 = vmul.u32 %v1250_v50, %v362_v33  ;;  %v236_v52 = vshrl.u32 %v1156_v56, %v235_v48  ;;  %vm252_vm8 = vcmp.lt.s32.totalorder %v1247_v47, 1 }
 0x124   :  { %v239_v53 = vor.u32 %v238_v40, %v237_v39  ;;  %v381_v54 = vadd.s32 1, %v1261_v36  ;;  %v242_v55 = vor.u32 %v241_v42, %v240_v41  ;;  %vm254_vm9 = vcmp.lt.s32.totalorder %v1247_v47, 3 }
 0x125   :  { %v245_v57 = vor.u32 %v244_v45, %v243_v44  ;;  %vm380_vm10 = vc.u32 %v1265_v38, %v1260_v35  ;;  %vm253_vm11 = vcmp.lt.s32.totalorder %v1247_v47, 2  ;;  %v266_v51 = vsel %vm254_vm9, %v248_v9, %v265_v28 }
 0x126   :  { %v256_v43 = vsel %vm252_vm8, %v236_v52, %v239_v53  ;;  %v382_v50 = vsel %vm380_vm10, %v381_v54, %v1261_v36  ;;  %v260_v56 = vsel %vm252_vm8, %v239_v53, %v242_v55  ;;  %v379_v22 = vadd.s32 %v1260_v35, %v1265_v38 }
 0x127   :  { %v257_v48 = vsel %vm255_vm4, %v245_v57, 2102212464  ;;  %v262_v58 = vsel %vm254_vm9, %v245_v57, %v261_v26  ;;  %v383_v59 = vadd.s32 %v382_v50, %v378_v49  ;;  %v264_v62 = vsel %vm252_vm8, %v242_v55, %v245_v57 }
 0x128   :  { %v258_v60 = vsel %vm254_vm9, %v242_v55, %v257_v48  ;;  %v263_v61 = vsel %vm253_vm11, %v260_v56, %v262_v58  ;;  %v267_v63 = vsel %vm253_vm11, %v264_v62, %v266_v51  ;;  %vm415_vm6 = vweird.f32 %v1233_v27 }
 0x129   :  { %v1286_v0 = vmul.u32.u64.low %v1245_v46, %v263_v61  ;;  %v1287_v1 = vmul.u32.u64.high %v1245_v46, %v263_v61, %v1286_v0  ;;  %v384_v2 = vadd.s32 536870912, %v383_v59  ;;  %v259_v5 = vsel %vm253_vm11, %v256_v43, %v258_v60 }
 0x12a   :  { %v1290_v3 = vmul.u32.u64.low %v1245_v46, %v267_v63  ;;  %v1291_v4 = vmul.u32.u64.high %v1245_v46, %v267_v63, %v1290_v3  ;;  %v275_v9 = vmul.u32 %v1245_v46, %v259_v5  ;;  %vm573_vm7 = vcmask 1043456  }
 0x12b   :  { %v385_v6 = vshrl.u32 %v384_v2, 30  ;;  %v278_v7 = vadd.s32 1, %v1287_v1  ;;  %vm312_vm11 = vweird.f32 %v1231_v25 }
 0x12c   :  { %vm277_vm12 = vc.u32 %v1291_v4, %v1286_v0  ;;  %v276_v40 = vadd.s32 %v1286_v0, %v1291_v4 }
 0x12d   :  { %v386_v8 = vshll.u32 %v385_v6, 30  ;;  %v279_v47 = vsel %vm277_vm12, %v278_v7, %v1287_v1  ;;  %v409_v50 = vsub.s32 4, %v385_v6  ;;  %vm524_vm12 = vcmask 64512  }
 0x12e   :  { %v280_v11 = vadd.s32 %v279_v47, %v275_v9 }
 0x12f   :  { %v387_v10 = vsub.s32 %v383_v59, %v386_v8  ;;  %v410_v60 = vsel %vm325_vm15, %v409_v50, %v385_v6 }
 0x130   :  { %v281_v13 = vadd.s32 536870912, %v280_v11  ;;  %v412_v30 = vsel %vm1302_vm0, 0, %v410_v60 }
 0x131   :  { %v389_v12 = vsub.s32 0, %v387_v10  ;;  %v416_v3 = vand.u32 3, %v412_v30 }
 0x132   :  { %v282_v15 = vshrl.u32 %v281_v13, 30 }
 0x133   :  { %v990_v14 = vmin.u32 %v389_v12, %v387_v10  ;;  %vm421_vm3 = vcmp.eq.s32.totalorder %v416_v3, 2  ;;  %vm418_vm4 = vcmp.eq.s32.totalorder %v416_v3, 0  ;;  %vm417_vm5 = vcmp.lt.s32.totalorder %v416_v3, 2 }
 0x134   :  { %v283_v17 = vshll.u32 %v282_v15, 30  ;;  %v306_v1 = vsub.s32 4, %v282_v15 }
 0x135   :  { %v391_v16 = vclz %v990_v14 }
 0x136   :  { %v284_v19 = vsub.s32 %v280_v11, %v283_v17  ;;  %v307_v5 = vsel %vm222_vm1, %v306_v1, %v282_v15 }
 0x137   :  { %v991_v18 = vadd.s32 4294967294, %v391_v16  ;;  %v309_v29 = vsel %vm1314_vm2, 0, %v307_v5 }
 0x138   :  { %v286_v20 = vsub.s32 0, %v284_v19  ;;  %v313_v11 = vand.u32 3, %v309_v29 }
 0x139   :  { %vm992_vm13 = vcmp.lt.s32.totalorder %v991_v18, 0 }
 0x13a   :  { %v394_v21 = vsel %vm992_vm13, 0, %v991_v18  ;;  %v986_v26 = vmin.u32 %v286_v20, %v284_v19  ;;  %vm318_vm8 = vcmp.eq.s32.totalorder %v313_v11, 2  ;;  %vm315_vm9 = vcmp.eq.s32.totalorder %v313_v11, 0 }
 0x13b   :  { %v395_v46 = vsub.s32 32, %v394_v21  ;;  %v399_v24 = vsub.s32 4294967266, %v394_v21  ;;  %v396_v28 = vshll.u32 %v387_v10, %v394_v21  ;;  %vm314_vm10 = vcmp.lt.s32.totalorder %v313_v11, 2 }
 0x13c   :  { %v288_v33 = vclz %v986_v26 }
 0x13d   :  { %v397_v31 = vshrl.u32 %v379_v22, %v395_v46  ;;  %v400_v32 = vadd.s32 127, %v399_v24 }
 0x13e   :  { %v987_v37 = vadd.s32 4294967294, %v288_v33 }
 0x13f   :  { %v398_v34 = vor.u32 %v397_v31, %v396_v28  ;;  %v401_v36 = vshll.u32 %v400_v32, 23 }
 0x140   :  { %vm988_vm14 = vcmp.lt.s32.totalorder %v987_v37, 0 }
 0x141   :  { %v402_v39 = vor.u32 4788187, %v401_v36  ;;  %v291_v41 = vsel %vm988_vm14, 0, %v987_v37  ;;  %v405_v44 = vcvt.s32.f32 %v398_v34  ;;  %v903_v37 = vld [vmem:[%s1394_s3] sm:$0xf]  ;;  %s1160_s3 = smov [#allocation8]  }
 0x142   :  { %v292_v45 = vsub.s32 32, %v291_v41  ;;  %v296_v49 = vsub.s32 4294967266, %v291_v41  ;;  %v293_v38 = vshll.u32 %v284_v19, %v291_v41  ;;  %s970_s20 = sshll.u32 %s1160_s3, 4  ;;  %s971_s20 = int_to_ptr.vmem [resolvable:$true] %s970_s20 }
 0x143   :  { %v403_v42 = vand.u32 2147483647, %v402_v39  ;;  %s1096_s21 = scalar_lea.vmem %s971_s20, 256  ;;  %p1101_p3 = scmp.lt.s32.totalorder %s971_s20, %s971_s20 }
 0x144   :  { %v294_v52 = vshrl.u32 %v276_v40, %v292_v45  ;;  %v297_v53 = vadd.s32 127, %v296_v49  ;;  %p1097_p2 = scmp.ne.s32.totalorder %s971_s20, %s1096_s21  ;;  %p1102_p4 = scmp.lt.s32.totalorder %s1096_s21, %s1096_s21 }
 0x145   :  { %v406_v35 = vmul.f32 %v405_v44, %v403_v42 }
 0x146   :  { %v295_v55 = vor.u32 %v294_v52, %v293_v38  ;;  %v298_v57 = vshll.u32 %v297_v53, 23  ;;  %p1103_p5 = por %p1102_p4, %p1101_p3 }
 0x147   :  { %v407_v54 = vxor.u32 2147483648, %v406_v35 }
 0x148   :  { %v299_v48 = vor.u32 4788187, %v298_v57  ;;  %v302_v59 = vcvt.s32.f32 %v295_v55  ;;  %p1104_p6 = pnand %p1103_p5, %p1097_p2 }
 0x149   :  { %v408_v51 = vsel %vm325_vm15, %v407_v54, %v406_v35 }
 0x14a   :  { %v411_v56 = vsel %vm1302_vm0, %v1233_v27, %v408_v51  ;;  %v300_v58 = vand.u32 2147483647, %v299_v48 }
 0x14b   :  { %1044 = vcosq.f32 %v411_v56 }
 0x14c   :  { %1046 = vsinq.f32 %v411_v56  ;;  %v303_v61 = vmul.f32 %v302_v59, %v300_v58 }
 0x14e   :  { %v304_v62 = vxor.u32 2147483648, %v303_v61 }
 0x150   :  { %v305_v0 = vsel %vm222_vm1, %v304_v62, %v303_v61 }
 0x151   :  { %v308_v2 = vsel %vm1314_vm2, %v1231_v25, %v305_v0 }
 0x152   :  { %1048 = vcosq.f32 %v308_v2 }
 0x153   :  { %1050 = vsinq.f32 %v308_v2 }
 0x155   :  { %v1045_v4 = vpop.eup %1044 }
 0x156   :  { %v1047_v6 = vpop.eup %1046  ;;  %v422_v7 = vxor.u32 2147483648, %v1045_v4 }
 0x157   :  { %v419_v8 = vxor.u32 2147483648, %v1047_v6 }
 0x158   :  { %v423_v9 = vsel %vm421_vm3, %v422_v7, %v1047_v6 }
 0x159   :  { %v420_v47 = vsel %vm418_vm4, %v1045_v4, %v419_v8 }
 0x15a   :  { %v424_v10 = vsel %vm417_vm5, %v420_v47, %v423_v9 }
 0x15b   :  { %v425_v12 = vsel %vm415_vm6, nan, %v424_v10 }
 0x15c   :  { %v427_v13 = vpack.c.bf16 %v425_v12, %v425_v12  ;;  %v1049_v14 = vpop.eup %1048 }
 0x15d   :  { %v1051_v15 = vpop.eup %1050  ;;  %v319_v16 = vxor.u32 2147483648, %v1049_v14 }
 0x15e   :  { %993 = vmatprep.subr.msk.bf16.mxu0 %vm573_vm7, %v427_v13  ;;  %1020 = vmatprep.subr.msk.bf16.mxu1 %vm573_vm7, %v427_v13  ;;  %v316_v17 = vxor.u32 2147483648, %v1051_v15 }
 0x15f   :  { %v320_v18 = vsel %vm318_vm8, %v319_v16, %v1051_v15 }
 0x160   :  { %v317_v19 = vsel %vm315_vm9, %v1049_v14, %v316_v17 }
 0x161   :  { %v321_v27 = vsel %vm314_vm10, %v317_v19, %v320_v18 }
 0x162   :  { %v322_v20 = vsel %vm312_vm11, nan, %v321_v27 }
 0x163   :  { %v426_v21 = vpack.c.bf16 %v322_v20, %v322_v20 }
 0x165   :  { %492 = vxpose.xlu0.c.b16.start.end [1/1] (short) %v426_v21, 128  ;;  %v575_v22 = vsel %vm573_vm7, %v426_v21, 0 }
 0x166   :  { %581 = vmatpush1.bf16.msra.mxu0 %v575_v22  ;;  %1021 = vmatpush1.bf16.msra.mxu1 %v575_v22 }
 0x167   :  { %1010 = vmatprep.subr.msk.bf16.mxu0 %vm573_vm7, %v427_v13 }
 0x182   :  { %508 = vxpose.xlu0.c.b16.start.end [1/1] (short) %v427_v13, 128 }
 0x1cb   :  { %v500_v46 = vpop.trf.xlu0 }
 0x1cc   :  { %994 = vmatmul.mubr.msk.bf16.vlgmr.msra.gmra.mrb[4].mxu0 %vm524_vm12, %v500_v46 }
 0x1cd   :  { %908 = vmatpush1.bf16.msra.mxu0 %v575_v22  ;;  %622 = vmatprep.mubr.bf16.mxu0 %v1153_v23 }
 0x1cf   :  { %v501_v24 = vpop.trf.xlu0 }
 0x1d3   :  { %v502_v25 = vpop.trf.xlu0 }
 0x1d4   :  { %995 = vmatmul.mubr.msk.bf16.gmra.mrb[8].mxu0 %vm524_vm12, %v501_v24 }
 0x1d5   :  { %632 = vmatprep.mubr.bf16.mxu0 %v1153_v23 }
 0x1d7   :  { %v503_v26 = vpop.trf.xlu0 }
 0x1db   :  { %v504_v28 = vpop.trf.xlu0 }
 0x1dc   :  { %996 = vmatmul.mubr.msk.bf16.gmra.mrb[12].mxu0 %vm524_vm12, %v502_v25 }
 0x1dd   :  { %642 = vmatprep.mubr.bf16.mxu0 %v1153_v23 }
 0x1df   :  { %v505_v31 = vpop.trf.xlu0 }
 0x1e3   :  { %v506_v32 = vpop.trf.xlu0 }
 0x1e4   :  { %997 = vmatmul.mubr.msk.bf16.gmra.mrb[16].mxu0 %vm524_vm12, %v503_v26  ;;  %1000 = vmatmul.mubr.msk.bf16.vlgmr.msra.gmra.mrb[0].mxu1 %vm524_vm12, %v506_v32 }
 0x1e5   :  { %652 = vmatprep.mubr.bf16.mxu0 %v1153_v23  ;;  %682 = vmatprep.mubr.bf16.mxu1 %v1153_v23 }
 0x1e7   :  { %v507_v33 = vpop.trf.xlu0 }
 0x1eb   :  { %v516_v34 = vpop.trf.xlu0 }
 0x1ec   :  { %998 = vmatmul.mubr.msk.bf16.gmra.mrb[20].mxu0 %vm524_vm12, %v504_v28  ;;  %1001 = vmatmul.mubr.msk.bf16.gmra.mrb[4].mxu1 %vm524_vm12, %v507_v33 }
 0x1ed   :  { %662 = vmatprep.mubr.bf16.mxu0 %v1153_v23  ;;  %692 = vmatprep.mubr.bf16.mxu1 %v1153_v23 }
 0x1ef   :  { %v517_v36 = vpop.trf.xlu0 }
 0x1f3   :  { %v518_v39 = vpop.trf.xlu0 }
 0x1f4   :  { %999 = vmatmul.mubr.msk.bf16.gmra.mrb[24].mxu0 %vm524_vm12, %v505_v31  ;;  %1002 = vmatmul.mubr.msk.bf16.gmra.mrb[8].mxu1 %vm524_vm12, %v516_v34 }
 0x1f5   :  { %702 = vmatprep.mubr.bf16.mxu1 %v1153_v23  ;;  %939 = vmatprep.mubr.bf16.mxu0 %v1153_v23 }
 0x1f7   :  { %v519_v40 = vpop.trf.xlu0 }
 0x1fb   :  { %v520_v41 = vpop.trf.xlu0 }
 0x1fc   :  { %1003 = vmatmul.mubr.msk.bf16.gmra.mrb[12].mxu1 %vm524_vm12, %v517_v36  ;;  %1011 = vmatmul.mubr.msk.bf16.vlgmr.msra.gmra.mrb[28].mxu0 %vm524_vm12, %v903_v37 }
 0x1fd   :  { %712 = vmatprep.mubr.bf16.mxu1 %v1153_v23 }
 0x1ff   :  { %v521_v42 = vpop.trf.xlu0 }
 0x203   :  { %v522_v44 = vpop.trf.xlu0 }
 0x204   :  { %1004 = vmatmul.mubr.msk.bf16.gmra.mrb[16].mxu1 %vm524_vm12, %v518_v39 }
 0x205   :  { %722 = vmatprep.mubr.bf16.mxu1 %v1153_v23 }
 0x207   :  { %v523_v45 = vpop.trf.xlu0 }
 0x20c   :  { %1005 = vmatmul.mubr.msk.bf16.gmra.mrb[20].mxu1 %vm524_vm12, %v519_v40 }
 0x20d   :  { %732 = vmatprep.mubr.bf16.mxu1 %v1153_v23 }
 0x214   :  { %1006 = vmatmul.mubr.msk.bf16.gmra.mrb[24].mxu1 %vm524_vm12, %v520_v41 }
 0x215   :  { %742 = vmatprep.mubr.bf16.mxu1 %v1153_v23 }
 0x21c   :  { %1007 = vmatmul.mubr.msk.bf16.gmra.mrb[28].mxu1 %vm524_vm12, %v521_v42 }
 0x21d   :  { %752 = vmatprep.mubr.bf16.mxu1 %v1153_v23 }
 0x224   :  { %1008 = vmatmul.mubr.msk.bf16.gmra.mrb[32].mxu1 %vm524_vm12, %v522_v44 }
 0x225   :  { %762 = vmatprep.mubr.bf16.mxu1 %v1153_v23 }
 0x22c   :  { %1009 = vmatmul.mubr.msk.bf16.gmra.mrb[36].mxu1 %vm524_vm12, %v523_v45 }
 0x29f   :  { %v614_v49 = vpop.f32.mrb[4].mxu0 }
 0x2a0   :  { %v616_v35 = vpop.f32.mrb[5].mxu0  ;;  %837 = vst [vmem:[#allocation7] sm:$0xff] %v614_v49 }
 0x2a1   :  { %v618_v38 = vpop.f32.mrb[6].mxu0  ;;  %838 = vst [vmem:[#allocation7 + $0x8] sm:$0xff] %v616_v35 }
 0x2a2   :  { %v620_v52 = vpop.f32.mrb[7].mxu0  ;;  %839 = vst [vmem:[#allocation7 + $0x10] sm:$0xff] %v618_v38 }
 0x2a3   :  { %840 = vst [vmem:[#allocation7 + $0x18] sm:$0xff] %v620_v52 }
 0x2a7   :  { %v624_v53 = vpop.f32.mrb[8].mxu0 }
 0x2a8   :  { %v626_v54 = vpop.f32.mrb[9].mxu0  ;;  %841 = vst [vmem:[#allocation7 + $0x20] sm:$0xff] %v624_v53 }
 0x2a9   :  { %v628_v55 = vpop.f32.mrb[10].mxu0  ;;  %842 = vst [vmem:[#allocation7 + $0x28] sm:$0xff] %v626_v54 }
 0x2aa   :  { %v630_v57 = vpop.f32.mrb[11].mxu0  ;;  %843 = vst [vmem:[#allocation7 + $0x30] sm:$0xff] %v628_v55 }
 0x2ab   :  { %844 = vst [vmem:[#allocation7 + $0x38] sm:$0xff] %v630_v57 }
 0x2af   :  { %v634_v23 = vpop.f32.mrb[12].mxu0 }
 0x2b0   :  { %v636_v43 = vpop.f32.mrb[13].mxu0  ;;  %845 = vst [vmem:[#allocation7 + $0x40] sm:$0xff] %v634_v23 }
 0x2b1   :  { %v638_v51 = vpop.f32.mrb[14].mxu0  ;;  %846 = vst [vmem:[#allocation7 + $0x48] sm:$0xff] %v636_v43 }
 0x2b2   :  { %v640_v50 = vpop.f32.mrb[15].mxu0  ;;  %847 = vst [vmem:[#allocation7 + $0x50] sm:$0xff] %v638_v51 }
 0x2b3   :  { %848 = vst [vmem:[#allocation7 + $0x58] sm:$0xff] %v640_v50 }
 0x2b7   :  { %v644_v48 = vpop.f32.mrb[16].mxu0  ;;  %v674_v56 = vpop.f32.mrb[0].mxu1 }
 0x2b8   :  { %v646_v58 = vpop.f32.mrb[17].mxu0  ;;  %v676_v59 = vpop.f32.mrb[1].mxu1  ;;  %849 = vst [vmem:[#allocation7 + $0x60] sm:$0xff] %v644_v48  ;;  %861 = vst [vmem:[#allocation7 + $0xc0] sm:$0xff] %v674_v56 }
 0x2b9   :  { %v648_v60 = vpop.f32.mrb[18].mxu0  ;;  %v678_v61 = vpop.f32.mrb[2].mxu1  ;;  %850 = vst [vmem:[#allocation7 + $0x68] sm:$0xff] %v646_v58  ;;  %862 = vst [vmem:[#allocation7 + $0xc8] sm:$0xff] %v676_v59 }
 0x2ba   :  { %v650_v62 = vpop.f32.mrb[19].mxu0  ;;  %v680_v30 = vpop.f32.mrb[3].mxu1  ;;  %851 = vst [vmem:[#allocation7 + $0x70] sm:$0xff] %v648_v60  ;;  %863 = vst [vmem:[#allocation7 + $0xd0] sm:$0xff] %v678_v61 }
 0x2bb   :  { %852 = vst [vmem:[#allocation7 + $0x78] sm:$0xff] %v650_v62  ;;  %864 = vst [vmem:[#allocation7 + $0xd8] sm:$0xff] %v680_v30 }
 0x2bf   :  { %v654_v63 = vpop.f32.mrb[20].mxu0  ;;  %v684_v0 = vpop.f32.mrb[4].mxu1 }
 0x2c0   :  { %v656_v1 = vpop.f32.mrb[21].mxu0  ;;  %v686_v2 = vpop.f32.mrb[5].mxu1  ;;  %853 = vst [vmem:[#allocation7 + $0x80] sm:$0xff] %v654_v63  ;;  %865 = vst [vmem:[#allocation7 + $0xe0] sm:$0xff] %v684_v0 }
 0x2c1   :  { %v658_v3 = vpop.f32.mrb[22].mxu0  ;;  %v688_v4 = vpop.f32.mrb[6].mxu1  ;;  %854 = vst [vmem:[#allocation7 + $0x88] sm:$0xff] %v656_v1  ;;  %866 = vst [vmem:[#allocation7 + $0xe8] sm:$0xff] %v686_v2 }
 0x2c2   :  { %v660_v5 = vpop.f32.mrb[23].mxu0  ;;  %v690_v6 = vpop.f32.mrb[7].mxu1  ;;  %855 = vst [vmem:[#allocation7 + $0x90] sm:$0xff] %v658_v3  ;;  %867 = vst [vmem:[#allocation7 + $0xf0] sm:$0xff] %v688_v4 }
 0x2c3   :  { %856 = vst [vmem:[#allocation7 + $0x98] sm:$0xff] %v660_v5  ;;  %868 = vst [vmem:[#allocation7 + $0xf8] sm:$0xff] %v690_v6 }
 0x2c7   :  { %v664_v7 = vpop.f32.mrb[24].mxu0  ;;  %v694_v8 = vpop.f32.mrb[8].mxu1 }
 0x2c8   :  { %v666_v29 = vpop.f32.mrb[25].mxu0  ;;  %v696_v9 = vpop.f32.mrb[9].mxu1  ;;  %857 = vst [vmem:[#allocation7 + $0xa0] sm:$0xff] %v664_v7  ;;  %869 = vst [vmem:[#allocation7 + $0x100] sm:$0xff] %v694_v8 }
 0x2c9   :  { %v668_v47 = vpop.f32.mrb[26].mxu0  ;;  %v698_v10 = vpop.f32.mrb[10].mxu1  ;;  %858 = vst [vmem:[#allocation7 + $0xa8] sm:$0xff] %v666_v29  ;;  %870 = vst [vmem:[#allocation7 + $0x108] sm:$0xff] %v696_v9 }
 0x2ca   :  { %v670_v11 = vpop.f32.mrb[27].mxu0  ;;  %v700_v12 = vpop.f32.mrb[11].mxu1  ;;  %859 = vst [vmem:[#allocation7 + $0xb0] sm:$0xff] %v668_v47  ;;  %871 = vst [vmem:[#allocation7 + $0x110] sm:$0xff] %v698_v10 }
 0x2cb   :  { %860 = vst [vmem:[#allocation7 + $0xb8] sm:$0xff] %v670_v11  ;;  %872 = vst [vmem:[#allocation7 + $0x118] sm:$0xff] %v700_v12 }
 0x2cf   :  { %v704_v13 = vpop.f32.mrb[12].mxu1  ;;  %v941_v14 = vpop.f32.mrb[28].mxu0 }
 0x2d0   :  { %v706_v15 = vpop.f32.mrb[13].mxu1  ;;  %v943_v16 = vpop.f32.mrb[29].mxu0  ;;  %873 = vst [vmem:[#allocation7 + $0x120] sm:$0xff] %v704_v13  ;;  %950 = vst [vmem:[#allocation8] sm:$0xff] %v941_v14 }
 0x2d1   :  { %v708_v17 = vpop.f32.mrb[14].mxu1  ;;  %v945_v18 = vpop.f32.mrb[30].mxu0  ;;  %874 = vst [vmem:[#allocation7 + $0x128] sm:$0xff] %v706_v15  ;;  %951 = vst [vmem:[#allocation8 + $0x8] sm:$0xff] %v943_v16 }
 0x2d2   :  { %v710_v19 = vpop.f32.mrb[15].mxu1  ;;  %v946_v27 = vpop.f32.mrb[31].mxu0  ;;  %875 = vst [vmem:[#allocation7 + $0x130] sm:$0xff] %v708_v17 }
 0x2d3   :  { %1107 = shalt.err (!%p1104_p6)
}
 0x2d4   :  { %s1108_s24 = scalar_lea.hbm %s1396_s5, 256 }
 0x2d5   :  { %p1109_p7 = scmp.ne.s32.totalorder %s1396_s5, %s1108_s24  ;;  %p1112_p8 = scmp.lt.u32.totalorder %s1108_s24, %s1396_s5 }
 0x2d7   :  { %p1114_p9 = pnand %p1112_p8, %p1109_p7 }
 0x2d9   :  { %1117 = shalt.err (!%p1114_p9)
}
 0x2da   :  { %973 = dma.vmem_to_hbm [thread:$0]  %s971_s20, 256, %s1396_s5, [#allocation9]   ;;  %876 = vst [vmem:[#allocation7 + $0x138] sm:$0xff] %v710_v19  ;;  %v714_v20 = vpop.f32.mrb[16].mxu1 }
 0x2db   :  { %v716_v21 = vpop.f32.mrb[17].mxu1  ;;  %877 = vst [vmem:[#allocation7 + $0x140] sm:$0xff] %v714_v20  ;;  %s1161_s5 = smov [#allocation7]  }
 0x2dc   :  { %v718_v22 = vpop.f32.mrb[18].mxu1  ;;  %878 = vst [vmem:[#allocation7 + $0x148] sm:$0xff] %v716_v21  ;;  %s957_s6 = sshll.u32 %s1161_s5, 4  ;;  %s958_s6 = int_to_ptr.vmem [resolvable:$true] %s957_s6 }
 0x2dd   :  { %v720_v46 = vpop.f32.mrb[19].mxu1  ;;  %879 = vst [vmem:[#allocation7 + $0x150] sm:$0xff] %v718_v22  ;;  %s1118_s7 = scalar_lea.vmem %s958_s6, 8192  ;;  %p1123_p11 = scmp.lt.s32.totalorder %s958_s6, %s958_s6 }
 0x2de   :  { %880 = vst [vmem:[#allocation7 + $0x158] sm:$0xff] %v720_v46  ;;  %p1119_p10 = scmp.ne.s32.totalorder %s958_s6, %s1118_s7  ;;  %p1124_p12 = scmp.lt.s32.totalorder %s1118_s7, %s1118_s7 }
 0x2df   :  { %v724_v24 = vpop.f32.mrb[20].mxu1 }
 0x2e0   :  { %v726_v25 = vpop.f32.mrb[21].mxu1  ;;  %881 = vst [vmem:[#allocation7 + $0x160] sm:$0xff] %v724_v24  ;;  %p1125_p13 = por %p1124_p12, %p1123_p11 }
 0x2e1   :  { %v728_v26 = vpop.f32.mrb[22].mxu1  ;;  %882 = vst [vmem:[#allocation7 + $0x168] sm:$0xff] %v726_v25 }
 0x2e2   :  { %v730_v28 = vpop.f32.mrb[23].mxu1  ;;  %883 = vst [vmem:[#allocation7 + $0x170] sm:$0xff] %v728_v26  ;;  %p1126_p0 = pnand %p1125_p13, %p1119_p10 }
 0x2e3   :  { %884 = vst [vmem:[#allocation7 + $0x178] sm:$0xff] %v730_v28 }
 0x2e7   :  { %v734_v31 = vpop.f32.mrb[24].mxu1 }
 0x2e8   :  { %v736_v32 = vpop.f32.mrb[25].mxu1  ;;  %885 = vst [vmem:[#allocation7 + $0x180] sm:$0xff] %v734_v31 }
 0x2e9   :  { %v738_v33 = vpop.f32.mrb[26].mxu1  ;;  %886 = vst [vmem:[#allocation7 + $0x188] sm:$0xff] %v736_v32 }
 0x2ea   :  { %v740_v34 = vpop.f32.mrb[27].mxu1  ;;  %887 = vst [vmem:[#allocation7 + $0x190] sm:$0xff] %v738_v33 }
 0x2eb   :  { %888 = vst [vmem:[#allocation7 + $0x198] sm:$0xff] %v740_v34 }
 0x2ef   :  { %v744_v36 = vpop.f32.mrb[28].mxu1 }
 0x2f0   :  { %v746_v37 = vpop.f32.mrb[29].mxu1  ;;  %889 = vst [vmem:[#allocation7 + $0x1a0] sm:$0xff] %v744_v36 }
 0x2f1   :  { %v748_v39 = vpop.f32.mrb[30].mxu1  ;;  %890 = vst [vmem:[#allocation7 + $0x1a8] sm:$0xff] %v746_v37 }
 0x2f2   :  { %v750_v40 = vpop.f32.mrb[31].mxu1  ;;  %891 = vst [vmem:[#allocation7 + $0x1b0] sm:$0xff] %v748_v39 }
 0x2f3   :  { %892 = vst [vmem:[#allocation7 + $0x1b8] sm:$0xff] %v750_v40 }
 0x2f7   :  { %v754_v41 = vpop.f32.mrb[32].mxu1 }
 0x2f8   :  { %v756_v42 = vpop.f32.mrb[33].mxu1  ;;  %893 = vst [vmem:[#allocation7 + $0x1c0] sm:$0xff] %v754_v41 }
 0x2f9   :  { %v758_v44 = vpop.f32.mrb[34].mxu1  ;;  %894 = vst [vmem:[#allocation7 + $0x1c8] sm:$0xff] %v756_v42 }
 0x2fa   :  { %v760_v45 = vpop.f32.mrb[35].mxu1  ;;  %895 = vst [vmem:[#allocation7 + $0x1d0] sm:$0xff] %v758_v44 }
 0x2fb   :  { %896 = vst [vmem:[#allocation7 + $0x1d8] sm:$0xff] %v760_v45 }
 0x2ff   :  { %v764_v49 = vpop.f32.mrb[36].mxu1 }
 0x300   :  { %v766_v35 = vpop.f32.mrb[37].mxu1  ;;  %897 = vst [vmem:[#allocation7 + $0x1e0] sm:$0xff] %v764_v49 }
 0x301   :  { %v768_v38 = vpop.f32.mrb[38].mxu1  ;;  %898 = vst [vmem:[#allocation7 + $0x1e8] sm:$0xff] %v766_v35 }
 0x302   :  { %v770_v52 = vpop.f32.mrb[39].mxu1  ;;  %899 = vst [vmem:[#allocation7 + $0x1f0] sm:$0xff] %v768_v38 }
 0x303   :  { %900 = vst [vmem:[#allocation7 + $0x1f8] sm:$0xff] %v770_v52 }
 0x304   :  { %1129 = shalt.err (!%p1126_p0)
}
 0x305   :  { %s1130_s10 = scalar_lea.hbm %s1395_s4, 8192 }
 0x306   :  { %p1131_p1 = scmp.ne.s32.totalorder %s1395_s4, %s1130_s10  ;;  %p1134_p2 = scmp.lt.u32.totalorder %s1130_s10, %s1395_s4 }
 0x308   :  { %p1136_p3 = pnand %p1134_p2, %p1131_p1 }
 0x30a   :  { %1139 = shalt.err (!%p1136_p3)
}
 0x30b   :  { %963 = dma.vmem_to_hbm [thread:$0]  %s958_s6, 8192, %s1395_s4, [#allocation4], %s1150_s0, %s1150_s0, %s1151_s15  }
 0x30c   :  { %1144 = dma.done.wait [#allocation4], 8192  }
 0x30d   :  { %1145 = vsyncadd [#allocation4], 4294959104 }
 0x30e   :  { %1146 = dma.done.wait [#allocation9], 256  }
 0x30f   :  { %1147 = vsyncadd [#allocation9], 4294967040 }
 0x310   :  { %980 = vsyncpa [#allocation3], 1 }
 0x311   :  { %981 = vsyncpa [#allocation6], 1 }
 0x312   :  { %982 = vsyncpa [#allocation4], 1 }
 0x313   :  { %983 = vsyncpa [#allocation9], 1 }

</bundles_post_ra>
